<compile_context>
chip_gen: v7x
topology: tpu7x:2x2x1
jax: 0.10.0
libtpu: 0.0.40
codegen_flags: <defaults>
</compile_context>

<pallas_src>
import jax
import jax.numpy as jnp
from jax.experimental import pallas as pl
from jax.experimental.pallas import tpu as pltpu


def _round_up(x, m):
    return (x + m - 1) // m * m


def _choose_tiles(n):
    """Pick (n_pad, tm, tk) so tiles divide n_pad and padding stays cheap.

    Prefer large reduction tiles (the compose kernel is HBM-bound on streaming A);
    accept padding only while it adds < ~15% extra adjacency traffic, otherwise fall
    back to smaller tiles (128 always works)."""
    for tk in (2048, 1024, 512, 256, 128):
        n_pad = _round_up(n, tk)
        if tk == 128 or (n_pad * n_pad) <= 1.15 * (n * n):
            tm = min(512, tk)           # tm | tk | n_pad for these powers of two
            return n_pad, tm, tk
    raise AssertionError("unreachable")


# ---------------------------------------------------------------------------
# Kernel 1: compose the full GCN embedding table
#   G = 0.5 * (H + A_norm @ H),  H precomputed (bf16) and streamed per tile.
# ---------------------------------------------------------------------------
def _compose_gcn_kernel(a_ref, hk_ref, hi_ref, g_ref, acc_ref):
    k = pl.program_id(1)

    @pl.when(k == 0)
    def _init():
        acc_ref[...] = jnp.zeros_like(acc_ref)

    # (tm, tk) bf16 @ (tk, D) bf16 -> f32 accumulate on the MXU.
    acc_ref[...] += jnp.dot(a_ref[...], hk_ref[...],
                            preferred_element_type=jnp.float32)

    @pl.when(k == pl.num_programs(1) - 1)
    def _finalize():
        g_ref[...] = (0.5 * (hi_ref[...].astype(jnp.float32) + acc_ref[...])
                      ).astype(g_ref.dtype)


def build_gcn_table(cluster_ids, centroids, adj_norm):
    """Returns the padded (n_pad, d_pad) bf16 GCN embedding table."""
    n = adj_norm.shape[0]
    c, d = centroids.shape
    d_pad = _round_up(d, 128)
    n_pad, tm, tk = _choose_tiles(n)

    # One-off H = centroids[cluster_ids] in bf16 (plain-JAX glue; done exactly once).
    cent_bf = centroids.astype(jnp.bfloat16)
    h = jnp.zeros((n_pad, d_pad), jnp.bfloat16).at[:n, :d].set(
        cent_bf[cluster_ids.astype(jnp.int32)])
    a = jnp.zeros((n_pad, n_pad), jnp.bfloat16).at[:n, :n].set(
        adj_norm.astype(jnp.bfloat16))

    grid = (n_pad // tm, n_pad // tk)
    table = pl.pallas_call(
        _compose_gcn_kernel,
        out_shape=jax.ShapeDtypeStruct((n_pad, d_pad), jnp.bfloat16),
        grid_spec=pltpu.PrefetchScalarGridSpec(
            num_scalar_prefetch=0,
            grid=grid,
            in_specs=[
                pl.BlockSpec((tm, tk), lambda i, k: (i, k)),        # adjacency block
                pl.BlockSpec((tk, d_pad), lambda i, k: (k, 0)),     # H reduction slice
                pl.BlockSpec((tm, d_pad), lambda i, k: (i, 0)),     # H row slice (resident)
            ],
            out_specs=pl.BlockSpec((tm, d_pad), lambda i, k: (i, 0)),
            scratch_shapes=[pltpu.VMEM((tm, d_pad), jnp.float32)],  # f32 accumulator
        ),
        compiler_params=pltpu.CompilerParams(
            dimension_semantics=("parallel", "arbitrary"),
            # Max tiles: A (512,2048) bf16 x2 + H_k (2048,128) bf16 x2 + H_i/out/acc
            # ~= 6 MiB; 32 MiB leaves ample headroom and fits v7x's 64 MiB VMEM.
            vmem_limit_bytes=32 * 1024 * 1024,
        ),
    )(a, h, h)
    return table


# ---------------------------------------------------------------------------
# Kernel 2: row gather  out[b, :] = table[offset_ids[b], :]
# Table stays in HBM; ids are scalar-prefetched into SMEM; ROWS rows per grid step
# are DMA'd into a double-buffered VMEM scratch with cross-step prefetch.
# ---------------------------------------------------------------------------
def _gather_kernel(ids_ref, table_hbm, out_ref, buf, sems):
    s = pl.program_id(0)
    last = pl.num_programs(0) - 1
    rows = out_ref.shape[0]

    def issue(step, slot_off):
        base = step * rows
        for r in range(rows):
            pltpu.make_async_copy(
                table_hbm.at[ids_ref[base + r]],
                buf.at[slot_off + r],
                sems.at[jax.lax.div(slot_off, rows)],
            ).start()

    slot = jax.lax.rem(s, 2)
    off = pl.multiple_of(slot * rows, rows)

    # Prime: issue this (first) step's copies into slot 0.
    @pl.when(s == 0)
    def _prime():
        issue(0, 0)

    # Cross-step prefetch: issue step s+1's copies into the other slot.
    @pl.when(s < last)
    def _prefetch():
        issue(s + 1, (1 - slot) * rows)

    # Wait for this step's `rows` copies (all signal the same per-slot semaphore).
    for _ in range(rows):
        pltpu.make_async_copy(table_hbm.at[0], buf.at[0], sems.at[slot]).wait()

    out_ref[...] = buf[pl.ds(off, rows), :]


def gather_rows(table_padded, offset_ids, num_valid_rows, d_out,
                out_dtype=jnp.float32):
    n_pad, d_pad = table_padded.shape
    b = offset_ids.shape[0]
    # >=16 sublanes (bf16 packing) per block; up to 64 rows per step for large batches.
    rows = min(64, _round_up(max(b, 1), 16))
    b_pad = _round_up(max(b, 1), rows)

    ids = jnp.clip(offset_ids.astype(jnp.int32), 0, num_valid_rows - 1)  # OOB guard
    ids = jnp.zeros((b_pad,), jnp.int32).at[:b].set(ids)

    out = pl.pallas_call(
        _gather_kernel,
        out_shape=jax.ShapeDtypeStruct((b_pad, d_pad), table_padded.dtype),
        grid_spec=pltpu.PrefetchScalarGridSpec(
            num_scalar_prefetch=1,
            grid=(b_pad // rows,),
            in_specs=[pl.BlockSpec(memory_space=pl.ANY)],   # table stays in HBM
            out_specs=pl.BlockSpec((rows, d_pad), lambda s, ids: (s, 0)),
            scratch_shapes=[
                pltpu.VMEM((2 * rows, d_pad), table_padded.dtype),  # double buffer
                pltpu.SemaphoreType.DMA((2,)),                      # one sem per slot
            ],
        ),
        compiler_params=pltpu.CompilerParams(
            # Kept "arbitrary": the cross-step DMA prefetch carries state between
            # consecutive steps, which must not be sharded across v7x TensorCores.
            dimension_semantics=("arbitrary",),
        ),
    )(ids, table_padded)
    return out[:b, :d_out].astype(out_dtype)


# ---------------------------------------------------------------------------
# Module wrapper mirroring CompEmbedding
# ---------------------------------------------------------------------------
class CompEmbedding:
    def __init__(self, field_dims, latent_dim, num_clusters, key):
        self.num_entities = int(sum(field_dims))
        self.latent_dim = int(latent_dim)
        self.num_clusters = int(num_clusters)

        k_cent, k_assign, k_adj = jax.random.split(key, 3)

        # Centroid embeddings: xavier_uniform, shape (num_clusters, latent_dim)
        bound = (6.0 / (num_clusters + latent_dim)) ** 0.5
        self.centroids = jax.random.uniform(
            k_cent, (num_clusters, latent_dim), jnp.float32, -bound, bound
        )

        # Assignment: each entity assigned to one cluster (kept as ids, not one-hot)
        self.cluster_ids = jax.random.randint(
            k_assign, (self.num_entities,), 0, num_clusters, dtype=jnp.int32
        )

        # Symmetrically-normalized adjacency with unit self-loops (plain-JAX glue)
        a = jax.random.bernoulli(
            k_adj, 0.1, (self.num_entities, self.num_entities)
        ).astype(jnp.float32)
        a = jnp.maximum(a, a.T)
        a = jnp.where(jnp.eye(self.num_entities, dtype=bool), 1.0, a)  # Â = A + I
        deg = jnp.sum(a, axis=1)
        d_inv_sqrt = 1.0 / jnp.sqrt(deg)
        self.adj_norm = a * d_inv_sqrt[:, None] * d_inv_sqrt[None, :]

        self.first_time_evaluating = True
        self._table_padded = None

    def forward(self, offset_ids):
        if self.first_time_evaluating:
            self._table_padded = build_gcn_table(
                self.cluster_ids, self.centroids, self.adj_norm
            )
            self.first_time_evaluating = False
        return gather_rows(
            self._table_padded, offset_ids, self.num_entities, self.latent_dim
        )

    # pure-JAX references for correctness checking
    def reference_f32(self, offset_ids):
        h = self.centroids[self.cluster_ids]
        g = 0.5 * (h + self.adj_norm @ h)
        return g[offset_ids]

    def reference_bf16(self, offset_ids):
        # Mirrors the kernel's bf16 operands, f32 accumulation, bf16 table storage.
        hb = self.centroids.astype(jnp.bfloat16)[self.cluster_ids].astype(jnp.float32)
        a = self.adj_norm.astype(jnp.bfloat16).astype(jnp.float32)
        g = (0.5 * (hb + a @ hb)).astype(jnp.bfloat16).astype(jnp.float32)
        return g[offset_ids]


if __name__ == "__main__":
    key = jax.random.PRNGKey(0)
    k_model, k_ids = jax.random.split(key)

    field_dims = [40, 24]   # sum = 64 entities
    latent_dim = 32
    num_clusters = 16
    batch = 8

    model = CompEmbedding(field_dims, latent_dim, num_clusters, k_model)

    offset_ids = jax.random.randint(
        k_ids, (batch,), 0, sum(field_dims), dtype=jnp.int32
    )

    out = jax.block_until_ready(model.forward(offset_ids))
    # second call exercises the cached-table (pure gather) path
    out2 = jax.block_until_ready(model.forward(offset_ids))

    ref_bf16 = model.reference_bf16(offset_ids)
    ref_f32 = model.reference_f32(offset_ids)

    assert out.shape == (batch, latent_dim), out.shape
    assert jnp.allclose(out, ref_bf16, atol=4e-3, rtol=2e-2), float(
        jnp.max(jnp.abs(out - ref_bf16))
    )
    assert jnp.allclose(out, ref_f32, atol=2e-2, rtol=2e-1), float(
        jnp.max(jnp.abs(out - ref_f32))
    )
    assert jnp.allclose(out2, out)

    print("KERNEL_OK")
</pallas_src>

<mosaic_0001>
module attributes {stable_mosaic.version = 11 : i64} {
  func.func @_compose_gcn_kernel(%arg0: i32, %arg1: i32, %arg2: memref<128x128xbf16, #tpu.memory_space<vmem>>, %arg3: memref<128x128xbf16, #tpu.memory_space<vmem>>, %arg4: memref<128x128xbf16, #tpu.memory_space<vmem>>, %arg5: memref<128x128xbf16, #tpu.memory_space<vmem>>, %arg6: memref<128x128xf32, #tpu.memory_space<vmem>>) attributes {dimension_semantics = [#tpu.dimension_semantics<parallel>, #tpu.dimension_semantics<arbitrary>], iteration_bounds = array<i64: 1, 1>, scalar_prefetch = 0 : i64, scratch_operands = 1 : i64, tpu.core_type = #tpu.core_type<tc>, window_params = [{transform_indices = @transform_0, window_bounds = array<i64: 128, 128>}, {transform_indices = @transform_1, window_bounds = array<i64: 128, 128>}, {transform_indices = @transform_2, window_bounds = array<i64: 128, 128>}, {transform_indices = @transform_3, window_bounds = array<i64: 128, 128>}]} {
    %c0_i32 = arith.constant 0 : i32
    %0 = arith.cmpi eq, %arg1, %c0_i32 : i32
    %1 = arith.extui %0 : i1 to i32
    %c0_i32_0 = arith.constant 0 : i32
    %2 = arith.cmpi ne, %1, %c0_i32_0 : i32
    scf.if %2 {
      %cst_10 = arith.constant 0.000000e+00 : f32
      %12 = vector.broadcast %cst_10 : f32 to vector<128x128xf32>
      %c0_11 = arith.constant 0 : index
      %c0_12 = arith.constant 0 : index
      %13 = vector.load %arg6[%c0_11, %c0_12] : memref<128x128xf32, #tpu.memory_space<vmem>>, vector<128x128xf32>
      tpu.vector_store %arg6[%c0_11, %c0_12], %12 {strides = array<i32>} : memref<128x128xf32, #tpu.memory_space<vmem>>, vector<128x128xf32>,
    } else {
    }
    %c0 = arith.constant 0 : index
    %c0_1 = arith.constant 0 : index
    %3 = vector.load %arg6[%c0, %c0_1] : memref<128x128xf32, #tpu.memory_space<vmem>>, vector<128x128xf32>
    %c0_2 = arith.constant 0 : index
    %c0_3 = arith.constant 0 : index
    %4 = vector.load %arg2[%c0_2, %c0_3] : memref<128x128xbf16, #tpu.memory_space<vmem>>, vector<128x128xbf16>
    %c0_4 = arith.constant 0 : index
    %c0_5 = arith.constant 0 : index
    %5 = vector.load %arg3[%c0_4, %c0_5] : memref<128x128xbf16, #tpu.memory_space<vmem>>, vector<128x128xbf16>
    %cst = arith.constant dense<0.000000e+00> : vector<128x128xf32>
    %6 = tpu.matmul %4, %5, %cst {dimension_numbers = #tpu.dot_dimension_numbers<[1], [0], [0], [1], [0, 0, 1, 1], [], []>} : vector<128x128xbf16>, vector<128x128xbf16>, vector<128x128xf32> -> vector<128x128xf32>
    %7 = arith.addf %3, %6 : vector<128x128xf32>
    %c0_6 = arith.constant 0 : index
    %c0_7 = arith.constant 0 : index
    %8 = vector.load %arg6[%c0_6, %c0_7] : memref<128x128xf32, #tpu.memory_space<vmem>>, vector<128x128xf32>
    tpu.vector_store %arg6[%c0_6, %c0_7], %7 {strides = array<i32>} : memref<128x128xf32, #tpu.memory_space<vmem>>, vector<128x128xf32>,
    %c0_i32_8 = arith.constant 0 : i32
    %9 = arith.cmpi eq, %arg1, %c0_i32_8 : i32
    %10 = arith.extui %9 : i1 to i32
    %c0_i32_9 = arith.constant 0 : i32
    %11 = arith.cmpi ne, %10, %c0_i32_9 : i32
    scf.if %11 {
      %c0_10 = arith.constant 0 : index
      %c0_11 = arith.constant 0 : index
      %12 = vector.load %arg4[%c0_10, %c0_11] : memref<128x128xbf16, #tpu.memory_space<vmem>>, vector<128x128xbf16>
      %13 = arith.extf %12 : vector<128x128xbf16> to vector<128x128xf32>
      %c0_12 = arith.constant 0 : index
      %c0_13 = arith.constant 0 : index
      %14 = vector.load %arg6[%c0_12, %c0_13] : memref<128x128xf32, #tpu.memory_space<vmem>>, vector<128x128xf32>
      %15 = arith.addf %13, %14 : vector<128x128xf32>
      %cst_14 = arith.constant 5.000000e-01 : f32
      %16 = vector.broadcast %cst_14 : f32 to vector<128x128xf32>
      %17 = arith.mulf %16, %15 : vector<128x128xf32>
      %18 = arith.truncf %17 : vector<128x128xf32> to vector<128x128xbf16>
      %c0_15 = arith.constant 0 : index
      %c0_16 = arith.constant 0 : index
      %19 = vector.load %arg5[%c0_15, %c0_16] : memref<128x128xbf16, #tpu.memory_space<vmem>>, vector<128x128xbf16>
      tpu.vector_store %arg5[%c0_15, %c0_16], %18 {strides = array<i32>} : memref<128x128xbf16, #tpu.memory_space<vmem>>, vector<128x128xbf16>,
    } else {
    }
    return
  }
  func.func @transform_0(%arg0: i32, %arg1: i32) -> (i32, i32) {
    %c0_i32 = arith.constant 0 : i32
    return %arg0, %arg1 : i32, i32
  }
  func.func @transform_1(%arg0: i32, %arg1: i32) -> (i32, i32) {
    %c0_i32 = arith.constant 0 : i32
    %c0_i32_0 = arith.constant 0 : i32
    return %arg1, %c0_i32 : i32, i32
  }
  func.func @transform_2(%arg0: i32, %arg1: i32) -> (i32, i32) {
    %c0_i32 = arith.constant 0 : i32
    %c0_i32_0 = arith.constant 0 : i32
    return %arg0, %c0_i32 : i32, i32
  }
  func.func @transform_3(%arg0: i32, %arg1: i32) -> (i32, i32) {
    %c0_i32 = arith.constant 0 : i32
    %c0_i32_0 = arith.constant 0 : i32
    return %arg0, %c0_i32 : i32, i32
  }
}

</mosaic_0001>

<bundles_post_ra>
// kernel: tpu_custom_call.1
= control target key start
LH: loop header
LB: loop body
LE: loop exit
PB: predicated region body
PF: predicated region fallthrough
CT: control target
= control target key end

     0   :  { %8 = vsyncpa [#allocation4], 0  ;;  %s938_s0 = inlined_call_operand.hbm [shape: bf16[128,128], index: 0, kind: input, shape index: {}]   ;;  %s939_s1 = inlined_call_operand.hbm [shape: bf16[128,128], index: 1, kind: input, shape index: {}]   ;;  %s940_s2 = inlined_call_operand.hbm [shape: bf16[128,128], index: 2, kind: input, shape index: {}]   ;;  %s941_s3 = inlined_call_operand.hbm [shape: bf16[128,128], index: 3, kind: output, shape index: {}]  }
   0x1   :  { %9 = vsyncpa [#allocation7], 0 }
   0x2   :  { %10 = vsyncpa [#allocation5], 0  ;;  %s845_s12 = smov [#allocation6]   ;;  %s846_s14 = smov [#allocation3]  }
   0x3   :  { %s28_s13 = sshll.u32 %s845_s12, 4  ;;  %s16_s15 = sshll.u32 %s846_s14, 4  ;;  %s29_s13 = int_to_ptr.vmem [resolvable:$true] %s28_s13  ;;  %s871_s15 = int_to_ptr.vmem [resolvable:$true] %s16_s15 }
   0x4   :  { %s751_s18 = scalar_lea.hbm %s939_s1, 1024 }
   0x5   :  { %p752_p0 = scmp.ne.s32.totalorder %s939_s1, %s751_s18  ;;  %p755_p1 = scmp.lt.u32.totalorder %s751_s18, %s939_s1 }
   0x7   :  { %p757_p2 = pnand %p755_p1, %p752_p0 }
   0x9   :  { %760 = shalt.err (!%p757_p2)
}
   0xa   :  { %s761_s23 = scalar_lea.vmem %s29_s13, 1024  ;;  %p766_p4 = scmp.lt.s32.totalorder %s29_s13, %s29_s13 }
   0xb   :  { %p762_p3 = scmp.ne.s32.totalorder %s29_s13, %s761_s23  ;;  %p767_p5 = scmp.lt.s32.totalorder %s761_s23, %s761_s23 }
   0xd   :  { %p768_p6 = por %p767_p5, %p766_p4 }
   0xf   :  { %p769_p7 = pnand %p768_p6, %p762_p3 }
  0x11   :  { %772 = shalt.err (!%p769_p7)
}
  0x12   :  { %s847_s24 = smov 64   ;;  %s848_s25 = smov 4  }
  0x13   :  { %34 = dma.hbm_to_vmem [thread:$0]  %s939_s1, 1024, %s29_s13, [#allocation7], %s847_s24, %s847_s24, %s848_s25  }
  0x14   :  { %s773_s30 = scalar_lea.hbm %s938_s0, 1024 }
  0x15   :  { %p774_p8 = scmp.ne.s32.totalorder %s938_s0, %s773_s30  ;;  %p777_p9 = scmp.lt.u32.totalorder %s773_s30, %s938_s0 }
  0x17   :  { %p779_p10 = pnand %p777_p9, %p774_p8 }
  0x19   :  { %782 = shalt.err (!%p779_p10)
}
  0x1a   :  { %s783_s8 = scalar_lea.vmem %s871_s15, 1024  ;;  %p788_p12 = scmp.lt.s32.totalorder %s871_s15, %s871_s15 }
  0x1b   :  { %p784_p11 = scmp.ne.s32.totalorder %s871_s15, %s783_s8  ;;  %p789_p13 = scmp.lt.s32.totalorder %s783_s8, %s783_s8 }
  0x1d   :  { %p790_p0 = por %p789_p13, %p788_p12 }
  0x1f   :  { %p791_p1 = pnand %p790_p0, %p784_p11 }
  0x21   :  { %794 = shalt.err (!%p791_p1)
}
  0x22   :  { %22 = dma.hbm_to_vmem [thread:$0]  %s938_s0, 1024, %s871_s15, [#allocation4], %s847_s24, %s847_s24, %s848_s25  }
  0x23   :  { %s849_s10 = smov [#allocation8]   ;;  %s795_s14 = scalar_lea.hbm %s940_s2, 1024 }
  0x24   :  { %s40_s11 = sshll.u32 %s849_s10, 4  ;;  %p796_p2 = scmp.ne.s32.totalorder %s940_s2, %s795_s14  ;;  %s41_s11 = int_to_ptr.vmem [resolvable:$true] %s40_s11 }
  0x25   :  { %p799_p3 = scmp.lt.u32.totalorder %s795_s14, %s940_s2 }
  0x27   :  { %p801_p4 = pnand %p799_p3, %p796_p2 }
  0x29   :  { %804 = shalt.err (!%p801_p4)
}
  0x2a   :  { %s805_s20 = scalar_lea.vmem %s41_s11, 1024  ;;  %p810_p6 = scmp.lt.s32.totalorder %s41_s11, %s41_s11 }
  0x2b   :  { %p806_p5 = scmp.ne.s32.totalorder %s41_s11, %s805_s20  ;;  %p811_p7 = scmp.lt.s32.totalorder %s805_s20, %s805_s20 }
  0x2d   :  { %p812_p8 = por %p811_p7, %p810_p6 }
  0x2f   :  { %p813_p9 = pnand %p812_p8, %p806_p5 }
  0x31   :  { %816 = shalt.err (!%p813_p9)
}
  0x32   :  { %46 = dma.hbm_to_vmem [thread:$0]  %s940_s2, 1024, %s41_s11, [#allocation7], %s847_s24, %s847_s24, %s848_s25  }
  0x33   :  { %839 = dma.done.wait [#allocation4], 1024  }
  0x34   :  { %840 = vsyncadd [#allocation4], 4294966272 }
  0x35   :  { %841 = dma.done.wait [#allocation7], 2048  }
  0x36   :  { %842 = vsyncadd [#allocation7], 4294965248  ;;  %v735_v0 = vld [vmem:[#allocation6] sm:$0xff]   ;;  %v736_v1 = vld [vmem:[#allocation6 + $0x8] sm:$0xff]   ;;  %s850_s2 = smov [#allocation9]  }
  0x37   :  { %681 = vmatprep.subr.bf16.mxu0 %v735_v0  ;;  %713 = vmatprep.subr.bf16.mxu1 %v735_v0  ;;  %v737_v2 = vld [vmem:[#allocation6 + $0x10] sm:$0xff]   ;;  %v738_v3 = vld [vmem:[#allocation6 + $0x18] sm:$0xff]   ;;  %v743_v4 = vld [vmem:[#allocation3] sm:$0xff]   ;;  %s518_s21 = sshll.u32 %s850_s2, 4  ;;  %s519_s21 = int_to_ptr.vmem [resolvable:$true] %s518_s21 }
  0x38   :  { %682 = vmatpush3.bf16.msra.mxu0 %v735_v0  ;;  %721 = vmatpush3.bf16.msra.mxu1 %v735_v0  ;;  %v744_v5 = vld [vmem:[#allocation3 + $0x20] sm:$0xff]   ;;  %v740_v7 = vld [vmem:[#allocation6 + $0x28] sm:$0xff]   ;;  %v741_v8 = vld [vmem:[#allocation6 + $0x30] sm:$0xff]   ;;  %s817_s22 = scalar_lea.vmem %s519_s21, 1024  ;;  %p822_p11 = scmp.lt.s32.totalorder %s519_s21, %s519_s21 }
  0x39   :  { %683 = vmatprep.subr.bf16.mxu0 %v736_v1  ;;  %714 = vmatprep.subr.bf16.mxu1 %v736_v1  ;;  %v739_v6 = vld [vmem:[#allocation6 + $0x20] sm:$0xff]   ;;  %v742_v9 = vld [vmem:[#allocation6 + $0x38] sm:$0xff]   ;;  %v745_v10 = vld [vmem:[#allocation3 + $0x8] sm:$0xff]   ;;  %p818_p10 = scmp.ne.s32.totalorder %s519_s21, %s817_s22  ;;  %p823_p12 = scmp.lt.s32.totalorder %s817_s22, %s817_s22 }
  0x3a   :  { %697 = vmatprep.mubr.bf16.mxu0 %v743_v4  ;;  %705 = vmatprep.mubr.bf16.mxu1 %v744_v5  ;;  %v746_v11 = vld [vmem:[#allocation3 + $0x28] sm:$0xff]   ;;  %v747_v12 = vld [vmem:[#allocation3 + $0x10] sm:$0xff]   ;;  %v749_v14 = vld [vmem:[#allocation3 + $0x18] sm:$0xff]  }
  0x3b   :  { %v748_v13 = vld [vmem:[#allocation3 + $0x30] sm:$0xff]   ;;  %v750_v15 = vld [vmem:[#allocation3 + $0x38] sm:$0xff]   ;;  %v651_v16 = vld [vmem:[#allocation8 + $0x8] sm:$0xff]   ;;  %p824_p13 = por %p823_p12, %p822_p11 }
  0x3c   :  { %684 = vmatpush3.bf16.msra.mxu0 %v736_v1  ;;  %722 = vmatpush3.bf16.msra.mxu1 %v736_v1  ;;  %v655_v17 = vld [vmem:[#allocation8 + $0x28] sm:$0xff]   ;;  %v580_v18 = vld [vmem:[#allocation8] sm:$0xff]   ;;  %v585_v20 = vunpack.c.l.bf16 %v651_v16  ;;  %v586_v24 = vunpack.c.h.bf16 %v651_v16  ;;  %v653_v30 = vld [vmem:[#allocation8 + $0x18] sm:$0xff]  }
  0x3d   :  { %685 = vmatprep.subr.bf16.mxu0 %v737_v2  ;;  %715 = vmatprep.subr.bf16.mxu1 %v737_v2  ;;  %v654_v19 = vld [vmem:[#allocation8 + $0x20] sm:$0xff]   ;;  %v601_v21 = vunpack.c.l.bf16 %v655_v17  ;;  %v581_v22 = vunpack.c.l.bf16 %v580_v18  ;;  %v602_v25 = vunpack.c.h.bf16 %v655_v17  ;;  %v582_v28 = vunpack.c.h.bf16 %v580_v18  ;;  %v657_v31 = vld [vmem:[#allocation8 + $0x38] sm:$0xff]   ;;  %v652_v36 = vld [vmem:[#allocation8 + $0x10] sm:$0xff]   ;;  %p825_p0 = pnand %p824_p13, %p818_p10 }
  0x3e   :  { %v597_v23 = vunpack.c.l.bf16 %v654_v19  ;;  %v598_v29 = vunpack.c.h.bf16 %v654_v19  ;;  %v656_v37 = vld [vmem:[#allocation8 + $0x30] sm:$0xff]   ;;  %v593_v46 = vunpack.c.l.bf16 %v653_v30  ;;  %v609_v47 = vunpack.c.l.bf16 %v657_v31 }
  0x3f   :  { %v589_v50 = vunpack.c.l.bf16 %v652_v36  ;;  %v605_v51 = vunpack.c.l.bf16 %v656_v37  ;;  %v594_v62 = vunpack.c.h.bf16 %v653_v30  ;;  %v610_v63 = vunpack.c.h.bf16 %v657_v31 }
  0x40   :  { %686 = vmatpush3.bf16.msra.mxu0 %v737_v2  ;;  %723 = vmatpush3.bf16.msra.mxu1 %v737_v2  ;;  %v590_v4 = vunpack.c.h.bf16 %v652_v36  ;;  %v606_v5 = vunpack.c.h.bf16 %v656_v37 }
  0x41   :  { %687 = vmatprep.subr.bf16.mxu0 %v738_v3  ;;  %716 = vmatprep.subr.bf16.mxu1 %v738_v3 }
  0x44   :  { %688 = vmatpush3.bf16.msra.mxu0 %v738_v3  ;;  %724 = vmatpush3.bf16.msra.mxu1 %v738_v3 }
  0x45   :  { %689 = vmatprep.subr.bf16.mxu0 %v739_v6  ;;  %717 = vmatprep.subr.bf16.mxu1 %v739_v6 }
  0x48   :  { %690 = vmatpush3.bf16.msra.mxu0 %v739_v6  ;;  %725 = vmatpush3.bf16.msra.mxu1 %v739_v6 }
  0x49   :  { %691 = vmatprep.subr.bf16.mxu0 %v740_v7  ;;  %718 = vmatprep.subr.bf16.mxu1 %v740_v7 }
  0x4c   :  { %692 = vmatpush3.bf16.msra.mxu0 %v740_v7  ;;  %726 = vmatpush3.bf16.msra.mxu1 %v740_v7 }
  0x4d   :  { %693 = vmatprep.subr.bf16.mxu0 %v741_v8  ;;  %719 = vmatprep.subr.bf16.mxu1 %v741_v8 }
  0x50   :  { %694 = vmatpush3.bf16.msra.mxu0 %v741_v8  ;;  %727 = vmatpush3.bf16.msra.mxu1 %v741_v8 }
  0x51   :  { %695 = vmatprep.subr.bf16.mxu0 %v742_v9  ;;  %720 = vmatprep.subr.bf16.mxu1 %v742_v9 }
  0x54   :  { %696 = vmatpush3.bf16.msra.mxu0 %v742_v9  ;;  %728 = vmatpush3.bf16.msra.mxu1 %v742_v9 }
  0x57   :  { %698 = vmatmul.mubr.bf16.vlgmr.msra.gmra.mrb[0].mxu0 %v745_v10  ;;  %706 = vmatmul.mubr.bf16.vlgmr.msra.gmra.mrb[0].mxu1 %v746_v11 }
  0x58   :  { %701 = vmatprep.mubr.bf16.mxu0 %v747_v12  ;;  %709 = vmatprep.mubr.bf16.mxu1 %v748_v13 }
  0x5f   :  { %702 = vmatmul.mubr.bf16.gmra.mrb[4].mxu0 %v749_v14  ;;  %710 = vmatmul.mubr.bf16.gmra.mrb[4].mxu1 %v750_v15 }
 0x12a   :  { %v699_v26 = vpop.f32.mrb[0].mxu0  ;;  %v707_v27 = vpop.f32.mrb[0].mxu1 }
 0x12b   :  { %v403_v32 = vadd.f32 %v699_v26, %v585_v20  ;;  %v411_v33 = vadd.f32 %v707_v27, %v601_v21  ;;  %v255_v34 = vpop.f32.mrb[1].mxu0  ;;  %v287_v35 = vpop.f32.mrb[1].mxu1 }
 0x12c   :  { %v401_v38 = vadd.f32 %v581_v22, %v255_v34  ;;  %v409_v39 = vadd.f32 %v597_v23, %v287_v35  ;;  %v700_v40 = vpop.f32.mrb[2].mxu0  ;;  %v708_v41 = vpop.f32.mrb[2].mxu1 }
 0x12d   :  { %v404_v42 = vadd.f32 %v700_v40, %v586_v24  ;;  %v412_v43 = vadd.f32 %v708_v41, %v602_v25  ;;  %v258_v44 = vpop.f32.mrb[3].mxu0  ;;  %v290_v45 = vpop.f32.mrb[3].mxu1  ;;  %v419_v52 = vmul.f32 0.5, %v403_v32  ;;  %v427_v53 = vmul.f32 0.5, %v411_v33 }
 0x12e   :  { %v402_v48 = vadd.f32 %v582_v28, %v258_v44  ;;  %v410_v49 = vadd.f32 %v598_v29, %v290_v45  ;;  %v417_v56 = vmul.f32 0.5, %v401_v38  ;;  %v425_v57 = vmul.f32 0.5, %v409_v39 }
 0x12f   :  { %v420_v54 = vmul.f32 0.5, %v404_v42  ;;  %v428_v55 = vmul.f32 0.5, %v412_v43 }
 0x130   :  { %v418_v58 = vmul.f32 0.5, %v402_v48  ;;  %v426_v59 = vmul.f32 0.5, %v410_v49 }
 0x131   :  { %v619_v60 = vpack.c.bf16 %v420_v54, %v419_v52  ;;  %v639_v61 = vpack.c.bf16 %v428_v55, %v427_v53 }
 0x132   :  { %v614_v0 = vpack.c.bf16 %v418_v58, %v417_v56  ;;  %v634_v1 = vpack.c.bf16 %v426_v59, %v425_v57  ;;  %v703_v2 = vpop.f32.mrb[4].mxu0  ;;  %v711_v3 = vpop.f32.mrb[4].mxu1 }
 0x133   :  { %658 = vst [vmem:[#allocation9 + $0x8] sm:$0xff] %v619_v60   ;;  %662 = vst [vmem:[#allocation9 + $0x28] sm:$0xff] %v639_v61   ;;  %v407_v6 = vadd.f32 %v703_v2, %v593_v46  ;;  %v415_v7 = vadd.f32 %v711_v3, %v609_v47  ;;  %v271_v8 = vpop.f32.mrb[5].mxu0  ;;  %v303_v9 = vpop.f32.mrb[5].mxu1 }
 0x134   :  { %615 = vst [vmem:[#allocation9] sm:$0xff] %v614_v0   ;;  %661 = vst [vmem:[#allocation9 + $0x20] sm:$0xff] %v634_v1   ;;  %v405_v10 = vadd.f32 %v589_v50, %v271_v8  ;;  %v413_v11 = vadd.f32 %v605_v51, %v303_v9  ;;  %v704_v12 = vpop.f32.mrb[6].mxu0  ;;  %v712_v13 = vpop.f32.mrb[6].mxu1 }
 0x135   :  { %v408_v14 = vadd.f32 %v704_v12, %v594_v62  ;;  %v416_v15 = vadd.f32 %v712_v13, %v610_v63  ;;  %v274_v16 = vpop.f32.mrb[7].mxu0  ;;  %v306_v17 = vpop.f32.mrb[7].mxu1  ;;  %v423_v20 = vmul.f32 0.5, %v407_v6  ;;  %v431_v21 = vmul.f32 0.5, %v415_v7 }
 0x136   :  { %v406_v18 = vadd.f32 %v590_v4, %v274_v16  ;;  %v414_v19 = vadd.f32 %v606_v5, %v306_v17  ;;  %v421_v24 = vmul.f32 0.5, %v405_v10  ;;  %v429_v25 = vmul.f32 0.5, %v413_v11 }
 0x137   :  { %v424_v22 = vmul.f32 0.5, %v408_v14  ;;  %v432_v23 = vmul.f32 0.5, %v416_v15 }
 0x138   :  { %v422_v26 = vmul.f32 0.5, %v406_v18  ;;  %v430_v27 = vmul.f32 0.5, %v414_v19 }
 0x139   :  { %v629_v28 = vpack.c.bf16 %v424_v22, %v423_v20  ;;  %v649_v29 = vpack.c.bf16 %v432_v23, %v431_v21 }
 0x13a   :  { %v624_v30 = vpack.c.bf16 %v422_v26, %v421_v24  ;;  %v644_v31 = vpack.c.bf16 %v430_v27, %v429_v25 }
 0x13b   :  { %660 = vst [vmem:[#allocation9 + $0x18] sm:$0xff] %v629_v28   ;;  %664 = vst [vmem:[#allocation9 + $0x38] sm:$0xff] %v649_v29  }
 0x13c   :  { %659 = vst [vmem:[#allocation9 + $0x10] sm:$0xff] %v624_v30   ;;  %663 = vst [vmem:[#allocation9 + $0x30] sm:$0xff] %v644_v31  }
 0x13d   :  { %828 = shalt.err (!%p825_p0)
}
 0x13e   :  { %s829_s27 = scalar_lea.hbm %s941_s3, 1024 }
 0x13f   :  { %p830_p1 = scmp.ne.s32.totalorder %s941_s3, %s829_s27  ;;  %p833_p2 = scmp.lt.u32.totalorder %s829_s27, %s941_s3 }
 0x141   :  { %p835_p3 = pnand %p833_p2, %p830_p1 }
 0x143   :  { %838 = shalt.err (!%p835_p3)
}
 0x144   :  { %524 = dma.vmem_to_hbm [thread:$0]  %s519_s21, 1024, %s941_s3, [#allocation5], %s847_s24, %s847_s24, %s848_s25  }
 0x145   :  { %843 = dma.done.wait [#allocation5], 1024  }
 0x146   :  { %844 = vsyncadd [#allocation5], 4294966272 }
 0x147   :  { %528 = vsyncpa [#allocation4], 1 }
 0x148   :  { %529 = vsyncpa [#allocation7], 1 }
 0x149   :  { %530 = vsyncpa [#allocation5], 1 }

</bundles_post_ra>
